<compile_context>
chip_gen: v6e
topology: v6e:2x2x1
jax: 0.10.0
libtpu: 0.0.40
codegen_flags: <defaults>
</compile_context>

<pallas_src>
import numpy as np

import jax
import jax.numpy as jnp
from jax.experimental import pallas as pl
from jax.experimental.pallas import tpu as pltpu

_LANES = 128


def _rup(n, m):
    return (n + m - 1) // m * m


# ---------------------------------------------------------------------------
# Fused forward kernel: embedding MLP -> `transforms` MAF steps -> Gaussian log-prob
# ---------------------------------------------------------------------------

def _build_fused_kernel(n_emb, n_transforms, n_hidden, theta_dim):
    """Returns kernel(theta_ref, x_ref, w_std_ref, w_ctx_ref, w_head_ref, b_ref, out_ref)."""
    H = _LANES

    def kernel(theta_ref, x_ref, w_std_ref, w_ctx_ref, w_head_ref, b_ref, out_ref):
        wi = 0  # static index into the (Lw, 128, 128) weight stack
        bi = 0  # static index into the (Lb, 128) bias stack

        def bdot(a_bf, w_bf):
            # bf16 MXU inputs, f32 accumulation
            return jnp.dot(a_bf, w_bf, preferred_element_type=jnp.float32)

        def bias(i):
            return b_ref[i][None, :]                    # (1, 128) f32, static row slice

        # ---- embedding MLP (ReLU between layers, linear last layer) ----
        h = x_ref[...]                                  # (TB, 128) bf16; padded lanes == 0
        emb_bf = None
        for li in range(n_emb):
            y = bdot(h, w_std_ref[wi]) + bias(bi)
            wi += 1
            bi += 1
            if li < n_emb - 1:
                h = jnp.maximum(y, 0.0).astype(jnp.bfloat16)
            else:
                emb_bf = y.astype(jnp.bfloat16)         # hoisted cast: reused for all transforms

        # ---- context contributions for ALL transforms: one wide dot, off the sequential chain ----
        ctx_all = bdot(emb_bf, w_ctx_ref[...])          # (TB, n_transforms*128) f32

        # ---- MAF transforms (sequential chain over running t) ----
        t = theta_ref[...].astype(jnp.float32)          # (TB, 128) f32; padded lanes == 0
        tb = t.shape[0]
        ladj = jnp.zeros((tb, 1), jnp.float32)
        for tr in range(n_transforms):
            hh = jnp.maximum(
                bdot(t.astype(jnp.bfloat16), w_std_ref[wi])
                + ctx_all[:, tr * H:(tr + 1) * H]
                + bias(bi),
                0.0)
            wi += 1
            bi += 1
            for _ in range(n_hidden - 1):
                hh = jnp.maximum(
                    bdot(hh.astype(jnp.bfloat16), w_std_ref[wi]) + bias(bi), 0.0)
                wi += 1
                bi += 1
            # merged shift / log_scale head: one (128, 256) dot, two static lane-aligned slices
            head = bdot(hh.astype(jnp.bfloat16), w_head_ref[tr])      # (TB, 256) f32
            shift = head[:, :H] + bias(bi)              # padded lanes exactly 0
            lscale = head[:, H:] + bias(bi + 1)         # padded lanes exactly 0
            bi += 2
            # TODO(synk): zuko soft-clamps log_scale; kept unclamped to match previous semantics.
            t = (t - shift) * jnp.exp(-lscale)          # padded lanes stay exactly 0
            ladj = ladj - jnp.sum(lscale, axis=-1, keepdims=True)

        # ---- standard-normal base log-prob + log|det J| ----
        const = -0.5 * float(theta_dim) * float(np.log(2.0 * np.pi))
        lp = -0.5 * jnp.sum(t * t, axis=-1, keepdims=True) + const + ladj   # (TB, 1)
        # lane-dense store: broadcast the log-prob column across all 128 lanes
        out_ref[...] = jnp.broadcast_to(lp, out_ref.shape).astype(out_ref.dtype)

    return kernel


# ---------------------------------------------------------------------------
# Parameter / mask construction (plain-JAX setup, done once)
# ---------------------------------------------------------------------------

def _init_linear(key, din, dout):
    kw, kb = jax.random.split(key)
    w = jax.random.normal(kw, (din, dout), jnp.float32) / jnp.sqrt(float(din))
    b = 0.01 * jax.random.normal(kb, (1, dout), jnp.float32)
    return w, b


def _pad2(a, rows, cols):
    return jnp.pad(a, ((0, rows - a.shape[0]), (0, cols - a.shape[1])))


def _pad_w(w):
    # all real dims are <= 128, so every padded weight is (128, 128)
    return _pad2(w, _LANES, _LANES).astype(jnp.bfloat16)


def _pad_b(b):
    return _pad2(b, 1, _LANES)                           # keep f32; padded lanes exactly zero


def _made_masks(theta_dim, context_dim, hidden_features, order):
    # degree of theta feature f = (its position in `order`) + 1; context has degree 0 (always on)
    theta_deg = np.argsort(order) + 1
    in_deg = np.concatenate([theta_deg, np.zeros(context_dim, dtype=np.int64)])
    out_deg = np.concatenate([theta_deg, theta_deg])     # (shift_f, log_scale_f) per feature
    masks, prev = [], in_deg
    for h in hidden_features:
        hd = np.arange(h) % (theta_dim - 1) + 1
        masks.append((hd[None, :] >= prev[:, None]).astype(np.float32))
        prev = hd
    masks.append((out_deg[None, :] > prev[:, None]).astype(np.float32))
    return [jnp.asarray(m) for m in masks]


def init_model(key, num_obs, embedding_output_dim, embedding_hidden,
               theta_dim, transforms, npe_hidden):
    assert len(npe_hidden) >= 1
    D, E = theta_dim, embedding_output_dim
    emb_dims = [num_obs * 2] + list(embedding_hidden) + [E]
    # packed-parameter layout assumes every real feature dim fits in one 128-lane tile
    assert all(d <= _LANES for d in emb_dims + list(npe_hidden) + [D, E, 2 * D])

    w_std, b_all = [], []          # (128,128) weights / (1,128) biases, in kernel consumption order
    w_ctx_cols, w_head_list = [], []

    # embedding MLP: num_obs*2 -> hidden... -> embedding_output_dim
    for din, dout in zip(emb_dims[:-1], emb_dims[1:]):
        key, k = jax.random.split(key)
        w, b = _init_linear(k, din, dout)
        w_std.append(_pad_w(w))
        b_all.append(_pad_b(b))

    # NPE: `transforms` masked-autoregressive affine layers with alternating orders.
    # MADE masks pre-applied to the weights; first layer split into theta / context parts
    # (context parts packed along N into one wide weight); output layer packed as a merged
    # (hidden, 2*128) shift|log_scale head.
    for tr in range(transforms):
        order = np.arange(D) if tr % 2 == 0 else np.arange(D)[::-1]
        masks = _made_masks(D, E, npe_hidden, order)
        dims = [D + E] + list(npe_hidden) + [2 * D]
        layers = []
        for din, dout in zip(dims[:-1], dims[1:]):
            key, k = jax.random.split(key)
            layers.append(_init_linear(k, din, dout))

        (w0, b0), m0 = layers[0], masks[0]
        w0 = w0 * m0
        w_std.append(_pad_w(w0[:D, :]))                  # theta part of first MADE layer
        w_ctx_cols.append(_pad_w(w0[D:, :]))             # context part -> packed along N
        b_all.append(_pad_b(b0))

        for (w, b), m in zip(layers[1:-1], masks[1:-1]):
            w_std.append(_pad_w(w * m))
            b_all.append(_pad_b(b))

        (wl, bl), ml = layers[-1], masks[-1]
        wl = wl * ml
        w_head_list.append(jnp.concatenate([_pad_w(wl[:, :D]), _pad_w(wl[:, D:])], axis=1))
        b_all.append(_pad_b(bl[:, :D]))                  # shift bias
        b_all.append(_pad_b(bl[:, D:]))                  # log_scale bias

    params = {
        "w_std": jnp.stack(w_std),                       # (Lw, 128, 128) bf16
        "w_ctx": jnp.concatenate(w_ctx_cols, axis=1),    # (128, transforms*128) bf16
        "w_head": jnp.stack(w_head_list),                # (transforms, 128, 256) bf16
        "b_all": jnp.concatenate(b_all, axis=0),         # (Lb, 128) f32
        "meta": {
            "n_emb": len(emb_dims) - 1,
            "n_transforms": transforms,
            "n_hidden": len(npe_hidden),
            "theta_dim": theta_dim,
            "x_dim": num_obs * 2,
        },
    }
    return params


# ---------------------------------------------------------------------------
# Forward pass (matches NPEWithEmbedding.forward(theta, x)); single fused pallas_call
# ---------------------------------------------------------------------------

def _choose_tile(B):
    """Batch tile: multiple of 16 sublanes (bf16-friendly), large to amortize per-step
    overhead, and sized so the grid has >=2 steps whenever the batch allows (v7x megacore)."""
    Bp = _rup(max(B, 1), 16)
    if Bp >= 4096:
        return 512
    if Bp >= 512:
        return 256
    if Bp >= 32:
        return min(256, _rup(Bp // 2, 16))
    return Bp


def npe_with_embedding_forward(params, theta, x):
    """Returns log p(theta | x), shape (B,)."""
    meta = params["meta"]
    D, Xd = meta["theta_dim"], meta["x_dim"]
    B = theta.shape[0]

    TB = _choose_tile(B)
    Bp = _rup(B, TB)

    # theta / x cast to bf16 on the host (first op on them is a bf16 MXU dot anyway);
    # padded rows / lanes are exactly zero.
    th = jnp.zeros((Bp, _LANES), jnp.bfloat16).at[:B, :D].set(theta.astype(jnp.bfloat16))
    xx = jnp.zeros((Bp, _LANES), jnp.bfloat16).at[:B, :Xd].set(x.astype(jnp.bfloat16))

    kern = _build_fused_kernel(meta["n_emb"], meta["n_transforms"], meta["n_hidden"], D)

    w_std, w_ctx, w_head, b_all = (params["w_std"], params["w_ctx"],
                                   params["w_head"], params["b_all"])

    data_spec = pl.BlockSpec((TB, _LANES), lambda i: (i, 0))

    def full_spec(a):
        # full-array block, same block every grid step (DMA'd once, stays resident in VMEM)
        return pl.BlockSpec(a.shape, lambda i, _r=len(a.shape): (0,) * _r)

    out = pl.pallas_call(
        kern,
        out_shape=jax.ShapeDtypeStruct((Bp, _LANES), jnp.float32),
        grid=(Bp // TB,),
        in_specs=[data_spec, data_spec,
                  full_spec(w_std), full_spec(w_ctx), full_spec(w_head), full_spec(b_all)],
        out_specs=pl.BlockSpec((TB, _LANES), lambda i: (i, 0)),
        compiler_params=pltpu.CompilerParams(dimension_semantics=("parallel",)),
    )(th, xx, w_std, w_ctx, w_head, b_all)

    return out[:B, 0]


# ---------------------------------------------------------------------------
# Demo
# ---------------------------------------------------------------------------

if __name__ == "__main__":
    num_obs = 8
    theta_dim = 8                 # NPE(8, ...) in the reference module
    embedding_output_dim = 16
    embedding_hidden = (32, 32)
    transforms = 2
    npe_hidden = (32, 32)
    B = 8

    key = jax.random.PRNGKey(0)
    kp, kt, kx = jax.random.split(key, 3)
    params = init_model(kp, num_obs, embedding_output_dim, embedding_hidden,
                        theta_dim, transforms, npe_hidden)

    theta = jax.random.normal(kt, (B, theta_dim), jnp.float32)
    x = jax.random.normal(kx, (B, num_obs * 2), jnp.float32)

    logp = npe_with_embedding_forward(params, theta, x)
    jax.block_until_ready(logp)
    assert logp.shape == (B,) and bool(jnp.all(jnp.isfinite(logp)))
    print("KERNEL_OK")
</pallas_src>

<mosaic_0001>
module attributes {stable_mosaic.version = 11 : i64} {
  func.func @kernel(%arg0: i32, %arg1: memref<16x128xbf16, #tpu.memory_space<vmem>>, %arg2: memref<16x128xbf16, #tpu.memory_space<vmem>>, %arg3: memref<7x128x128xbf16, #tpu.memory_space<vmem>>, %arg4: memref<128x256xbf16, #tpu.memory_space<vmem>>, %arg5: memref<2x128x256xbf16, #tpu.memory_space<vmem>>, %arg6: memref<11x128xf32, #tpu.memory_space<vmem>>, %arg7: memref<16x128xf32, #tpu.memory_space<vmem>>) attributes {dimension_semantics = [#tpu.dimension_semantics<parallel>], iteration_bounds = array<i64: 1>, scalar_prefetch = 0 : i64, scratch_operands = 0 : i64, tpu.core_type = #tpu.core_type<tc>, window_params = [{transform_indices = @transform_0, window_bounds = array<i64: 16, 128>}, {transform_indices = @transform_1, window_bounds = array<i64: 16, 128>}, {pipeline_mode = #tpu.pipeline_mode<synchronous>, transform_indices = @transform_2, window_bounds = array<i64: 7, 128, 128>}, {pipeline_mode = #tpu.pipeline_mode<synchronous>, transform_indices = @transform_3, window_bounds = array<i64: 128, 256>}, {pipeline_mode = #tpu.pipeline_mode<synchronous>, transform_indices = @transform_4, window_bounds = array<i64: 2, 128, 256>}, {pipeline_mode = #tpu.pipeline_mode<synchronous>, transform_indices = @transform_5, window_bounds = array<i64: 11, 128>}, {transform_indices = @transform_6, window_bounds = array<i64: 16, 128>}]} {
    %c0 = arith.constant 0 : index
    %c0_0 = arith.constant 0 : index
    %0 = vector.load %arg2[%c0, %c0_0] : memref<16x128xbf16, #tpu.memory_space<vmem>>, vector<16x128xbf16>
    %c0_1 = arith.constant 0 : index
    %c0_2 = arith.constant 0 : index
    %c0_3 = arith.constant 0 : index
    %1 = vector.load %arg3[%c0_1, %c0_2, %c0_3] : memref<7x128x128xbf16, #tpu.memory_space<vmem>>, vector<1x128x128xbf16>
    %2 = vector.shape_cast %1 : vector<1x128x128xbf16> to vector<128x128xbf16>
    %cst = arith.constant dense<0.000000e+00> : vector<16x128xf32>
    %3 = tpu.matmul %0, %2, %cst {dimension_numbers = #tpu.dot_dimension_numbers<[1], [0], [0], [1], [0, 0, 1, 1], [], []>} : vector<16x128xbf16>, vector<128x128xbf16>, vector<16x128xf32> -> vector<16x128xf32>
    %c0_4 = arith.constant 0 : index
    %c0_5 = arith.constant 0 : index
    %4 = vector.load %arg6[%c0_4, %c0_5] : memref<11x128xf32, #tpu.memory_space<vmem>>, vector<1x128xf32>
    %5 = vector.shape_cast %4 : vector<1x128xf32> to vector<128xf32>
    %6 = vector.shape_cast %5 : vector<128xf32> to vector<1x128xf32>
    %7 = vector.broadcast %6 : vector<1x128xf32> to vector<16x128xf32>
    %8 = arith.addf %3, %7 : vector<16x128xf32>
    %cst_6 = arith.constant 0.000000e+00 : f32
    %9 = vector.broadcast %cst_6 : f32 to vector<16x128xf32>
    %10 = arith.maximumf %8, %9 : vector<16x128xf32>
    %11 = arith.truncf %10 : vector<16x128xf32> to vector<16x128xbf16>
    %c1 = arith.constant 1 : index
    %c0_7 = arith.constant 0 : index
    %c0_8 = arith.constant 0 : index
    %12 = vector.load %arg3[%c1, %c0_7, %c0_8] : memref<7x128x128xbf16, #tpu.memory_space<vmem>>, vector<1x128x128xbf16>
    %13 = vector.shape_cast %12 : vector<1x128x128xbf16> to vector<128x128xbf16>
    %cst_9 = arith.constant dense<0.000000e+00> : vector<16x128xf32>
    %14 = tpu.matmul %11, %13, %cst_9 {dimension_numbers = #tpu.dot_dimension_numbers<[1], [0], [0], [1], [0, 0, 1, 1], [], []>} : vector<16x128xbf16>, vector<128x128xbf16>, vector<16x128xf32> -> vector<16x128xf32>
    %c1_10 = arith.constant 1 : index
    %c0_11 = arith.constant 0 : index
    %15 = vector.load %arg6[%c1_10, %c0_11] : memref<11x128xf32, #tpu.memory_space<vmem>>, vector<1x128xf32>
    %16 = vector.shape_cast %15 : vector<1x128xf32> to vector<128xf32>
    %17 = vector.shape_cast %16 : vector<128xf32> to vector<1x128xf32>
    %18 = vector.broadcast %17 : vector<1x128xf32> to vector<16x128xf32>
    %19 = arith.addf %14, %18 : vector<16x128xf32>
    %cst_12 = arith.constant 0.000000e+00 : f32
    %20 = vector.broadcast %cst_12 : f32 to vector<16x128xf32>
    %21 = arith.maximumf %19, %20 : vector<16x128xf32>
    %22 = arith.truncf %21 : vector<16x128xf32> to vector<16x128xbf16>
    %c2 = arith.constant 2 : index
    %c0_13 = arith.constant 0 : index
    %c0_14 = arith.constant 0 : index
    %23 = vector.load %arg3[%c2, %c0_13, %c0_14] : memref<7x128x128xbf16, #tpu.memory_space<vmem>>, vector<1x128x128xbf16>
    %24 = vector.shape_cast %23 : vector<1x128x128xbf16> to vector<128x128xbf16>
    %cst_15 = arith.constant dense<0.000000e+00> : vector<16x128xf32>
    %25 = tpu.matmul %22, %24, %cst_15 {dimension_numbers = #tpu.dot_dimension_numbers<[1], [0], [0], [1], [0, 0, 1, 1], [], []>} : vector<16x128xbf16>, vector<128x128xbf16>, vector<16x128xf32> -> vector<16x128xf32>
    %c2_16 = arith.constant 2 : index
    %c0_17 = arith.constant 0 : index
    %26 = vector.load %arg6[%c2_16, %c0_17] : memref<11x128xf32, #tpu.memory_space<vmem>>, vector<1x128xf32>
    %27 = vector.shape_cast %26 : vector<1x128xf32> to vector<128xf32>
    %28 = vector.shape_cast %27 : vector<128xf32> to vector<1x128xf32>
    %29 = vector.broadcast %28 : vector<1x128xf32> to vector<16x128xf32>
    %30 = arith.addf %25, %29 : vector<16x128xf32>
    %31 = arith.truncf %30 : vector<16x128xf32> to vector<16x128xbf16>
    %c0_18 = arith.constant 0 : index
    %c0_19 = arith.constant 0 : index
    %32 = vector.load %arg4[%c0_18, %c0_19] : memref<128x256xbf16, #tpu.memory_space<vmem>>, vector<128x256xbf16>
    %cst_20 = arith.constant dense<0.000000e+00> : vector<16x256xf32>
    %33 = tpu.matmul %31, %32, %cst_20 {dimension_numbers = #tpu.dot_dimension_numbers<[1], [0], [0], [1], [0, 0, 1, 1], [], []>} : vector<16x128xbf16>, vector<128x256xbf16>, vector<16x256xf32> -> vector<16x256xf32>
    %c0_21 = arith.constant 0 : index
    %c0_22 = arith.constant 0 : index
    %34 = vector.load %arg1[%c0_21, %c0_22] : memref<16x128xbf16, #tpu.memory_space<vmem>>, vector<16x128xbf16>
    %35 = arith.extf %34 : vector<16x128xbf16> to vector<16x128xf32>
    %cst_23 = arith.constant 0.000000e+00 : f32
    %36 = vector.broadcast %cst_23 : f32 to vector<16x1xf32>
    %37 = arith.truncf %35 : vector<16x128xf32> to vector<16x128xbf16>
    %c3 = arith.constant 3 : index
    %c0_24 = arith.constant 0 : index
    %c0_25 = arith.constant 0 : index
    %38 = vector.load %arg3[%c3, %c0_24, %c0_25] : memref<7x128x128xbf16, #tpu.memory_space<vmem>>, vector<1x128x128xbf16>
    %39 = vector.shape_cast %38 : vector<1x128x128xbf16> to vector<128x128xbf16>
    %cst_26 = arith.constant dense<0.000000e+00> : vector<16x128xf32>
    %40 = tpu.matmul %37, %39, %cst_26 {dimension_numbers = #tpu.dot_dimension_numbers<[1], [0], [0], [1], [0, 0, 1, 1], [], []>} : vector<16x128xbf16>, vector<128x128xbf16>, vector<16x128xf32> -> vector<16x128xf32>
    %41 = vector.extract_strided_slice %33 {offsets = [0, 0], sizes = [16, 128], strides = [1, 1]} : vector<16x256xf32> to vector<16x128xf32>
    %42 = arith.addf %40, %41 : vector<16x128xf32>
    %c3_27 = arith.constant 3 : index
    %c0_28 = arith.constant 0 : index
    %43 = vector.load %arg6[%c3_27, %c0_28] : memref<11x128xf32, #tpu.memory_space<vmem>>, vector<1x128xf32>
    %44 = vector.shape_cast %43 : vector<1x128xf32> to vector<128xf32>
    %45 = vector.shape_cast %44 : vector<128xf32> to vector<1x128xf32>
    %46 = vector.broadcast %45 : vector<1x128xf32> to vector<16x128xf32>
    %47 = arith.addf %42, %46 : vector<16x128xf32>
    %cst_29 = arith.constant 0.000000e+00 : f32
    %48 = vector.broadcast %cst_29 : f32 to vector<16x128xf32>
    %49 = arith.maximumf %47, %48 : vector<16x128xf32>
    %50 = arith.truncf %49 : vector<16x128xf32> to vector<16x128xbf16>
    %c4 = arith.constant 4 : index
    %c0_30 = arith.constant 0 : index
    %c0_31 = arith.constant 0 : index
    %51 = vector.load %arg3[%c4, %c0_30, %c0_31] : memref<7x128x128xbf16, #tpu.memory_space<vmem>>, vector<1x128x128xbf16>
    %52 = vector.shape_cast %51 : vector<1x128x128xbf16> to vector<128x128xbf16>
    %cst_32 = arith.constant dense<0.000000e+00> : vector<16x128xf32>
    %53 = tpu.matmul %50, %52, %cst_32 {dimension_numbers = #tpu.dot_dimension_numbers<[1], [0], [0], [1], [0, 0, 1, 1], [], []>} : vector<16x128xbf16>, vector<128x128xbf16>, vector<16x128xf32> -> vector<16x128xf32>
    %c4_33 = arith.constant 4 : index
    %c0_34 = arith.constant 0 : index
    %54 = vector.load %arg6[%c4_33, %c0_34] : memref<11x128xf32, #tpu.memory_space<vmem>>, vector<1x128xf32>
    %55 = vector.shape_cast %54 : vector<1x128xf32> to vector<128xf32>
    %56 = vector.shape_cast %55 : vector<128xf32> to vector<1x128xf32>
    %57 = vector.broadcast %56 : vector<1x128xf32> to vector<16x128xf32>
    %58 = arith.addf %53, %57 : vector<16x128xf32>
    %cst_35 = arith.constant 0.000000e+00 : f32
    %59 = vector.broadcast %cst_35 : f32 to vector<16x128xf32>
    %60 = arith.maximumf %58, %59 : vector<16x128xf32>
    %61 = arith.truncf %60 : vector<16x128xf32> to vector<16x128xbf16>
    %c0_36 = arith.constant 0 : index
    %c0_37 = arith.constant 0 : index
    %c0_38 = arith.constant 0 : index
    %62 = vector.load %arg5[%c0_36, %c0_37, %c0_38] : memref<2x128x256xbf16, #tpu.memory_space<vmem>>, vector<1x128x256xbf16>
    %63 = vector.shape_cast %62 : vector<1x128x256xbf16> to vector<128x256xbf16>
    %cst_39 = arith.constant dense<0.000000e+00> : vector<16x256xf32>
    %64 = tpu.matmul %61, %63, %cst_39 {dimension_numbers = #tpu.dot_dimension_numbers<[1], [0], [0], [1], [0, 0, 1, 1], [], []>} : vector<16x128xbf16>, vector<128x256xbf16>, vector<16x256xf32> -> vector<16x256xf32>
    %65 = vector.extract_strided_slice %64 {offsets = [0, 0], sizes = [16, 128], strides = [1, 1]} : vector<16x256xf32> to vector<16x128xf32>
    %c5 = arith.constant 5 : index
    %c0_40 = arith.constant 0 : index
    %66 = vector.load %arg6[%c5, %c0_40] : memref<11x128xf32, #tpu.memory_space<vmem>>, vector<1x128xf32>
    %67 = vector.shape_cast %66 : vector<1x128xf32> to vector<128xf32>
    %68 = vector.shape_cast %67 : vector<128xf32> to vector<1x128xf32>
    %69 = vector.broadcast %68 : vector<1x128xf32> to vector<16x128xf32>
    %70 = arith.addf %65, %69 : vector<16x128xf32>
    %71 = vector.extract_strided_slice %64 {offsets = [0, 128], sizes = [16, 128], strides = [1, 1]} : vector<16x256xf32> to vector<16x128xf32>
    %c6 = arith.constant 6 : index
    %c0_41 = arith.constant 0 : index
    %72 = vector.load %arg6[%c6, %c0_41] : memref<11x128xf32, #tpu.memory_space<vmem>>, vector<1x128xf32>
    %73 = vector.shape_cast %72 : vector<1x128xf32> to vector<128xf32>
    %74 = vector.shape_cast %73 : vector<128xf32> to vector<1x128xf32>
    %75 = vector.broadcast %74 : vector<1x128xf32> to vector<16x128xf32>
    %76 = arith.addf %71, %75 : vector<16x128xf32>
    %77 = arith.subf %35, %70 : vector<16x128xf32>
    %cst_42 = arith.constant 0.000000e+00 : f32
    %78 = vector.broadcast %cst_42 : f32 to vector<16x128xf32>
    %79 = arith.subf %78, %76 : vector<16x128xf32>
    %80 = math.exp %79 : vector<16x128xf32>
    %81 = arith.mulf %77, %80 : vector<16x128xf32>
    %cst_43 = arith.constant dense<0.000000e+00> : vector<16xf32>
    %82 = vector.multi_reduction <add>, %76, %cst_43 [1] : vector<16x128xf32> to vector<16xf32>
    %83 = vector.shape_cast %82 : vector<16xf32> to vector<16x1xf32>
    %84 = arith.subf %36, %83 : vector<16x1xf32>
    %85 = arith.truncf %81 : vector<16x128xf32> to vector<16x128xbf16>
    %c5_44 = arith.constant 5 : index
    %c0_45 = arith.constant 0 : index
    %c0_46 = arith.constant 0 : index
    %86 = vector.load %arg3[%c5_44, %c0_45, %c0_46] : memref<7x128x128xbf16, #tpu.memory_space<vmem>>, vector<1x128x128xbf16>
    %87 = vector.shape_cast %86 : vector<1x128x128xbf16> to vector<128x128xbf16>
    %cst_47 = arith.constant dense<0.000000e+00> : vector<16x128xf32>
    %88 = tpu.matmul %85, %87, %cst_47 {dimension_numbers = #tpu.dot_dimension_numbers<[1], [0], [0], [1], [0, 0, 1, 1], [], []>} : vector<16x128xbf16>, vector<128x128xbf16>, vector<16x128xf32> -> vector<16x128xf32>
    %89 = vector.extract_strided_slice %33 {offsets = [0, 128], sizes = [16, 128], strides = [1, 1]} : vector<16x256xf32> to vector<16x128xf32>
    %90 = arith.addf %88, %89 : vector<16x128xf32>
    %c7 = arith.constant 7 : index
    %c0_48 = arith.constant 0 : index
    %91 = vector.load %arg6[%c7, %c0_48] : memref<11x128xf32, #tpu.memory_space<vmem>>, vector<1x128xf32>
    %92 = vector.shape_cast %91 : vector<1x128xf32> to vector<128xf32>
    %93 = vector.shape_cast %92 : vector<128xf32> to vector<1x128xf32>
    %94 = vector.broadcast %93 : vector<1x128xf32> to vector<16x128xf32>
    %95 = arith.addf %90, %94 : vector<16x128xf32>
    %cst_49 = arith.constant 0.000000e+00 : f32
    %96 = vector.broadcast %cst_49 : f32 to vector<16x128xf32>
    %97 = arith.maximumf %95, %96 : vector<16x128xf32>
    %98 = arith.truncf %97 : vector<16x128xf32> to vector<16x128xbf16>
    %c6_50 = arith.constant 6 : index
    %c0_51 = arith.constant 0 : index
    %c0_52 = arith.constant 0 : index
    %99 = vector.load %arg3[%c6_50, %c0_51, %c0_52] : memref<7x128x128xbf16, #tpu.memory_space<vmem>>, vector<1x128x128xbf16>
    %100 = vector.shape_cast %99 : vector<1x128x128xbf16> to vector<128x128xbf16>
    %cst_53 = arith.constant dense<0.000000e+00> : vector<16x128xf32>
    %101 = tpu.matmul %98, %100, %cst_53 {dimension_numbers = #tpu.dot_dimension_numbers<[1], [0], [0], [1], [0, 0, 1, 1], [], []>} : vector<16x128xbf16>, vector<128x128xbf16>, vector<16x128xf32> -> vector<16x128xf32>
    %c8 = arith.constant 8 : index
    %c0_54 = arith.constant 0 : index
    %102 = vector.load %arg6[%c8, %c0_54] : memref<11x128xf32, #tpu.memory_space<vmem>>, vector<1x128xf32>
    %103 = vector.shape_cast %102 : vector<1x128xf32> to vector<128xf32>
    %104 = vector.shape_cast %103 : vector<128xf32> to vector<1x128xf32>
    %105 = vector.broadcast %104 : vector<1x128xf32> to vector<16x128xf32>
    %106 = arith.addf %101, %105 : vector<16x128xf32>
    %cst_55 = arith.constant 0.000000e+00 : f32
    %107 = vector.broadcast %cst_55 : f32 to vector<16x128xf32>
    %108 = arith.maximumf %106, %107 : vector<16x128xf32>
    %109 = arith.truncf %108 : vector<16x128xf32> to vector<16x128xbf16>
    %c1_56 = arith.constant 1 : index
    %c0_57 = arith.constant 0 : index
    %c0_58 = arith.constant 0 : index
    %110 = vector.load %arg5[%c1_56, %c0_57, %c0_58] : memref<2x128x256xbf16, #tpu.memory_space<vmem>>, vector<1x128x256xbf16>
    %111 = vector.shape_cast %110 : vector<1x128x256xbf16> to vector<128x256xbf16>
    %cst_59 = arith.constant dense<0.000000e+00> : vector<16x256xf32>
    %112 = tpu.matmul %109, %111, %cst_59 {dimension_numbers = #tpu.dot_dimension_numbers<[1], [0], [0], [1], [0, 0, 1, 1], [], []>} : vector<16x128xbf16>, vector<128x256xbf16>, vector<16x256xf32> -> vector<16x256xf32>
    %113 = vector.extract_strided_slice %112 {offsets = [0, 0], sizes = [16, 128], strides = [1, 1]} : vector<16x256xf32> to vector<16x128xf32>
    %c9 = arith.constant 9 : index
    %c0_60 = arith.constant 0 : index
    %114 = vector.load %arg6[%c9, %c0_60] : memref<11x128xf32, #tpu.memory_space<vmem>>, vector<1x128xf32>
    %115 = vector.shape_cast %114 : vector<1x128xf32> to vector<128xf32>
    %116 = vector.shape_cast %115 : vector<128xf32> to vector<1x128xf32>
    %117 = vector.broadcast %116 : vector<1x128xf32> to vector<16x128xf32>
    %118 = arith.addf %113, %117 : vector<16x128xf32>
    %119 = vector.extract_strided_slice %112 {offsets = [0, 128], sizes = [16, 128], strides = [1, 1]} : vector<16x256xf32> to vector<16x128xf32>
    %c10 = arith.constant 10 : index
    %c0_61 = arith.constant 0 : index
    %120 = vector.load %arg6[%c10, %c0_61] : memref<11x128xf32, #tpu.memory_space<vmem>>, vector<1x128xf32>
    %121 = vector.shape_cast %120 : vector<1x128xf32> to vector<128xf32>
    %122 = vector.shape_cast %121 : vector<128xf32> to vector<1x128xf32>
    %123 = vector.broadcast %122 : vector<1x128xf32> to vector<16x128xf32>
    %124 = arith.addf %119, %123 : vector<16x128xf32>
    %125 = arith.subf %81, %118 : vector<16x128xf32>
    %cst_62 = arith.constant 0.000000e+00 : f32
    %126 = vector.broadcast %cst_62 : f32 to vector<16x128xf32>
    %127 = arith.subf %126, %124 : vector<16x128xf32>
    %128 = math.exp %127 : vector<16x128xf32>
    %129 = arith.mulf %125, %128 : vector<16x128xf32>
    %cst_63 = arith.constant dense<0.000000e+00> : vector<16xf32>
    %130 = vector.multi_reduction <add>, %124, %cst_63 [1] : vector<16x128xf32> to vector<16xf32>
    %131 = vector.shape_cast %130 : vector<16xf32> to vector<16x1xf32>
    %132 = arith.subf %84, %131 : vector<16x1xf32>
    %133 = arith.mulf %129, %129 : vector<16x128xf32>
    %cst_64 = arith.constant dense<0.000000e+00> : vector<16xf32>
    %134 = vector.multi_reduction <add>, %133, %cst_64 [1] : vector<16x128xf32> to vector<16xf32>
    %135 = vector.shape_cast %134 : vector<16xf32> to vector<16x1xf32>
    %cst_65 = arith.constant -5.000000e-01 : f32
    %136 = vector.broadcast %cst_65 : f32 to vector<16x1xf32>
    %137 = arith.mulf %136, %135 : vector<16x1xf32>
    %cst_66 = arith.constant -7.35150814 : f32
    %138 = vector.broadcast %cst_66 : f32 to vector<16x1xf32>
    %139 = arith.addf %137, %138 : vector<16x1xf32>
    %140 = arith.addf %139, %132 : vector<16x1xf32>
    %141 = vector.shape_cast %140 : vector<16x1xf32> to vector<16x1xf32>
    %142 = vector.broadcast %141 : vector<16x1xf32> to vector<16x128xf32>
    %c0_67 = arith.constant 0 : index
    %c0_68 = arith.constant 0 : index
    %143 = vector.load %arg7[%c0_67, %c0_68] : memref<16x128xf32, #tpu.memory_space<vmem>>, vector<16x128xf32>
    tpu.vector_store %arg7[%c0_67, %c0_68], %142 {strides = array<i32>} : memref<16x128xf32, #tpu.memory_space<vmem>>, vector<16x128xf32>,
    return
  }
  func.func @transform_0(%arg0: i32) -> (i32, i32) {
    %c0_i32 = arith.constant 0 : i32
    %c0_i32_0 = arith.constant 0 : i32
    return %arg0, %c0_i32 : i32, i32
  }
  func.func @transform_1(%arg0: i32) -> (i32, i32) {
    %c0_i32 = arith.constant 0 : i32
    %c0_i32_0 = arith.constant 0 : i32
    return %arg0, %c0_i32 : i32, i32
  }
  func.func @transform_2(%arg0: i32) -> (i32, i32, i32) {
    %c0_i32 = arith.constant 0 : i32
    %c0_i32_0 = arith.constant 0 : i32
    %c0_i32_1 = arith.constant 0 : i32
    %c0_i32_2 = arith.constant 0 : i32
    return %c0_i32, %c0_i32_0, %c0_i32_1 : i32, i32, i32
  }
  func.func @transform_3(%arg0: i32) -> (i32, i32) {
    %c0_i32 = arith.constant 0 : i32
    %c0_i32_0 = arith.constant 0 : i32
    %c0_i32_1 = arith.constant 0 : i32
    return %c0_i32, %c0_i32_0 : i32, i32
  }
  func.func @transform_4(%arg0: i32) -> (i32, i32, i32) {
    %c0_i32 = arith.constant 0 : i32
    %c0_i32_0 = arith.constant 0 : i32
    %c0_i32_1 = arith.constant 0 : i32
    %c0_i32_2 = arith.constant 0 : i32
    return %c0_i32, %c0_i32_0, %c0_i32_1 : i32, i32, i32
  }
  func.func @transform_5(%arg0: i32) -> (i32, i32) {
    %c0_i32 = arith.constant 0 : i32
    %c0_i32_0 = arith.constant 0 : i32
    %c0_i32_1 = arith.constant 0 : i32
    return %c0_i32, %c0_i32_0 : i32, i32
  }
  func.func @transform_6(%arg0: i32) -> (i32, i32) {
    %c0_i32 = arith.constant 0 : i32
    %c0_i32_0 = arith.constant 0 : i32
    return %arg0, %c0_i32 : i32, i32
  }
}

</mosaic_0001>

<bundles_post_ra>
// kernel: tpu_custom_call.1
= control target key start
LH: loop header
LB: loop body
LE: loop exit
PB: predicated region body
PF: predicated region fallthrough
CT: control target
= control target key end

     0   :  { %11 = vsyncpa [#allocation3], 0  ;;  %s2243_s0 = inlined_call_operand.hbm [shape: bf16[16,128], index: 0, kind: input, shape index: {}]   ;;  %s2244_s1 = inlined_call_operand.hbm [shape: bf16[16,128], index: 1, kind: input, shape index: {}]   ;;  %s2245_s2 = inlined_call_operand.hbm [shape: bf16[7,128,128], index: 2, kind: input, shape index: {}]   ;;  %s2246_s3 = inlined_call_operand.hbm [shape: bf16[128,256], index: 3, kind: input, shape index: {}]   ;;  %s2247_s4 = inlined_call_operand.hbm [shape: bf16[2,128,256], index: 4, kind: input, shape index: {}]   ;;  %s2248_s5 = inlined_call_operand.hbm [shape: f32[11,128], index: 5, kind: input, shape index: {}]   ;;  %s2249_s6 = inlined_call_operand.hbm [shape: f32[16,128], index: 6, kind: output, shape index: {}]  }
   0x1   :  { %12 = vsyncpa [#allocation6], 0 }
   0x2   :  { %13 = vsyncpa [#allocation9], 0 }
   0x3   :  { %14 = vsyncpa [#allocation12], 0 }
   0x4   :  { %15 = vsyncpa [#allocation4], 0  ;;  %s2060_s21 = smov [#allocation5]   ;;  %s2061_s23 = smov [#allocation8]  }
   0x5   :  { %s33_s22 = sshll.u32 %s2060_s21, 4  ;;  %s57_s24 = sshll.u32 %s2061_s23, 4  ;;  %s34_s22 = int_to_ptr.vmem [resolvable:$true] %s33_s22  ;;  %s58_s24 = int_to_ptr.vmem [resolvable:$true] %s57_s24 }
   0x6   :  { %s1918_s25 = scalar_lea.vmem %s34_s22, 128  ;;  %p1923_p1 = scmp.lt.s32.totalorder %s34_s22, %s34_s22 }
   0x7   :  { %p1919_p0 = scmp.ne.s32.totalorder %s34_s22, %s1918_s25  ;;  %p1924_p2 = scmp.lt.s32.totalorder %s1918_s25, %s1918_s25 }
   0x9   :  { %p1925_p3 = por %p1924_p2, %p1923_p1 }
   0xb   :  { %p1926_p4 = pnand %p1925_p3, %p1919_p0 }
   0xd   :  { %1929 = shalt.err (!%p1926_p4)
}
   0xe   :  { %s2062_s26 = smov 64   ;;  %s2063_s27 = smov 4  }
   0xf   :  { %39 = dma.hbm_to_vmem [thread:$0]  %s2244_s1, 128, %s34_s22, [#allocation6], %s2062_s26, %s2062_s26, %s2063_s27  }
  0x10   :  { %s1938_s30 = scalar_lea.vmem %s58_s24, 2048  ;;  %p1943_p6 = scmp.lt.s32.totalorder %s58_s24, %s58_s24 }
  0x11   :  { %p1939_p5 = scmp.ne.s32.totalorder %s58_s24, %s1938_s30  ;;  %p1944_p7 = scmp.lt.s32.totalorder %s1938_s30, %s1938_s30 }
  0x13   :  { %p1945_p8 = por %p1944_p7, %p1943_p6 }
  0x15   :  { %p1946_p9 = pnand %p1945_p8, %p1939_p5 }
  0x17   :  { %1949 = shalt.err (!%p1946_p9)
}
  0x18   :  { %s2064_s7 = smov 128   ;;  %s2065_s8 = smov 8  }
  0x19   :  { %63 = dma.hbm_to_vmem [thread:$0]  %s2246_s3, 2048, %s58_s24, [#allocation9], %s2064_s7, %s2064_s7, %s2065_s8  }
  0x1a   :  { %s2066_s11 = smov [#allocation2]   ;;  %s2067_s13 = smov [#allocation7]  }
  0x1b   :  { %s21_s12 = sshll.u32 %s2066_s11, 4  ;;  %s45_s1 = sshll.u32 %s2067_s13, 4  ;;  %s22_s12 = int_to_ptr.vmem [resolvable:$true] %s21_s12  ;;  %s46_s1 = int_to_ptr.vmem [resolvable:$true] %s45_s1 }
  0x1c   :  { %s1958_s14 = scalar_lea.vmem %s22_s12, 128  ;;  %p1963_p11 = scmp.lt.s32.totalorder %s22_s12, %s22_s12 }
  0x1d   :  { %p1959_p10 = scmp.ne.s32.totalorder %s22_s12, %s1958_s14  ;;  %p1964_p12 = scmp.lt.s32.totalorder %s1958_s14, %s1958_s14 }
  0x1f   :  { %p1965_p13 = por %p1964_p12, %p1963_p11 }
  0x21   :  { %p1966_p0 = pnand %p1965_p13, %p1959_p10 }
  0x23   :  { %1969 = shalt.err (!%p1966_p0)
}
  0x24   :  { %27 = dma.hbm_to_vmem [thread:$0]  %s2243_s0, 128, %s22_s12, [#allocation3], %s2062_s26, %s2062_s26, %s2063_s27  }
  0x25   :  { %s1978_s3 = scalar_lea.vmem %s46_s1, 7168  ;;  %p1983_p2 = scmp.lt.s32.totalorder %s46_s1, %s46_s1 }
  0x26   :  { %p1979_p1 = scmp.ne.s32.totalorder %s46_s1, %s1978_s3  ;;  %p1984_p3 = scmp.lt.s32.totalorder %s1978_s3, %s1978_s3 }
  0x28   :  { %p1985_p4 = por %p1984_p3, %p1983_p2 }
  0x2a   :  { %p1986_p5 = pnand %p1985_p4, %p1979_p1 }
  0x2c   :  { %1989 = shalt.err (!%p1986_p5)
}
  0x2d   :  { %51 = dma.hbm_to_vmem [thread:$0]  %s2245_s2, 7168, %s46_s1, [#allocation6], %s2062_s26, %s2062_s26, %s2063_s27  }
  0x2e   :  { %s2068_s19 = smov [#allocation10]   ;;  %s2069_s21 = smov [#allocation11]  }
  0x2f   :  { %s69_s20 = sshll.u32 %s2068_s19, 4  ;;  %s81_s22 = sshll.u32 %s2069_s21, 4  ;;  %s70_s20 = int_to_ptr.vmem [resolvable:$true] %s69_s20  ;;  %s82_s22 = int_to_ptr.vmem [resolvable:$true] %s81_s22 }
  0x30   :  { %s1998_s0 = scalar_lea.vmem %s70_s20, 4096  ;;  %p2003_p7 = scmp.lt.s32.totalorder %s70_s20, %s70_s20 }
  0x31   :  { %p1999_p6 = scmp.ne.s32.totalorder %s70_s20, %s1998_s0  ;;  %p2004_p8 = scmp.lt.s32.totalorder %s1998_s0, %s1998_s0 }
  0x33   :  { %p2005_p9 = por %p2004_p8, %p2003_p7 }
  0x35   :  { %p2006_p10 = pnand %p2005_p9, %p1999_p6 }
  0x37   :  { %2009 = shalt.err (!%p2006_p10)
}
  0x38   :  { %75 = dma.hbm_to_vmem [thread:$0]  %s2247_s4, 4096, %s70_s20, [#allocation9], %s2064_s7, %s2064_s7, %s2065_s8  }
  0x39   :  { %s2018_s2 = scalar_lea.vmem %s82_s22, 256  ;;  %p2023_p12 = scmp.lt.s32.totalorder %s82_s22, %s82_s22 }
  0x3a   :  { %p2019_p11 = scmp.ne.s32.totalorder %s82_s22, %s2018_s2  ;;  %p2024_p13 = scmp.lt.s32.totalorder %s2018_s2, %s2018_s2 }
  0x3c   :  { %p2025_p0 = por %p2024_p13, %p2023_p12 }
  0x3e   :  { %p2026_p1 = pnand %p2025_p0, %p2019_p11 }
  0x40   :  { %2029 = shalt.err (!%p2026_p1)
}
  0x41   :  { %87 = dma.hbm_to_vmem [thread:$0]  %s2248_s5, 256, %s82_s22, [#allocation12], %s2064_s7, %s2064_s7, %s2065_s8  }
  0x42   :  { %2050 = dma.done.wait [#allocation3], 128  }
  0x43   :  { %2051 = vsyncadd [#allocation3], 4294967168 }
  0x44   :  { %2052 = dma.done.wait [#allocation6], 7296  }
  0x45   :  { %2053 = vsyncadd [#allocation6], 4294960000 }
  0x46   :  { %2054 = dma.done.wait [#allocation9], 6144  }
  0x47   :  { %2055 = vsyncadd [#allocation9], 4294961152 }
  0x48   :  { %2056 = dma.done.wait [#allocation12], 256  }
  0x49   :  { %2057 = vsyncadd [#allocation12], 4294967040  ;;  %v2070_v0 = vmov 0.0   ;;  %vm2071_vm0 = vmmov 0   ;;  %v1771_v1 = vld [vmem:[#allocation7 + $0x38] sm:$0xff]   ;;  %v1772_v2 = vld [vmem:[#allocation7 + $0x30] sm:$0xff]  }
  0x4a   :  { %1617 = vmatprep.subr.bf16.mxu0 %v2070_v0  ;;  %1633 = vmatprep.mubr.msk.bf16.mxu0 %vm2071_vm0, %v2070_v0  ;;  %v1773_v3 = vld [vmem:[#allocation7 + $0x28] sm:$0xff]   ;;  %v1780_v4 = vld [vmem:[#allocation7 + $0x78] sm:$0xff]   ;;  %v1774_v5 = vld [vmem:[#allocation7 + $0x20] sm:$0xff]   ;;  %s2073_s4 = smov [#allocation13]  }
  0x4b   :  { %1637 = vmatprep.subr.bf16.mxu1 %v2070_v0  ;;  %1653 = vmatprep.mubr.msk.bf16.mxu1 %vm2071_vm0, %v2070_v0  ;;  %v1781_v6 = vld [vmem:[#allocation7 + $0x70] sm:$0xff]   ;;  %v1775_v7 = vld [vmem:[#allocation7 + $0x18] sm:$0xff]   ;;  %v1782_v8 = vld [vmem:[#allocation7 + $0x68] sm:$0xff]   ;;  %s1422_s5 = sshll.u32 %s2073_s4, 4  ;;  %s1423_s5 = int_to_ptr.vmem [resolvable:$true] %s1422_s5 }
  0x4c   :  { %1618 = vmatpush3.bf16.msra.mxu0 %v1771_v1  ;;  %1638 = vmatpush3.bf16.msra.mxu1 %v1780_v4  ;;  %v1776_v9 = vld [vmem:[#allocation7 + $0x10] sm:$0xff]   ;;  %v1783_v10 = vld [vmem:[#allocation7 + $0x60] sm:$0xff]   ;;  %v1777_v11 = vld [vmem:[#allocation7 + $0x8] sm:$0xff]   ;;  %s2030_s27 = scalar_lea.vmem %s1423_s5, 256  ;;  %p2035_p3 = scmp.lt.s32.totalorder %s1423_s5, %s1423_s5 }
  0x4d   :  { %1619 = vmatprep.subr.bf16.mxu0 %v2070_v0  ;;  %1639 = vmatprep.subr.bf16.mxu1 %v2070_v0  ;;  %v1784_v12 = vld [vmem:[#allocation7 + $0x58] sm:$0xff]   ;;  %v1778_v13 = vld [vmem:[#allocation7] sm:$0xff]   ;;  %v1785_v15 = vld [vmem:[#allocation7 + $0x50] sm:$0xff]   ;;  %p2031_p2 = scmp.ne.s32.totalorder %s1423_s5, %s2030_s27  ;;  %p2036_p4 = scmp.lt.s32.totalorder %s2030_s27, %s2030_s27 }
  0x4e   :  { %v1779_v14 = vld [vmem:[#allocation5] sm:$0xff]   ;;  %v1786_v16 = vld [vmem:[#allocation7 + $0x48] sm:$0xff]   ;;  %v1787_v17 = vld [vmem:[#allocation7 + $0x40] sm:$0xff]  }
  0x4f   :  { %v1788_v18 = vld [vmem:[#allocation7 + $0xb8] sm:$0xff]   ;;  %v1789_v19 = vld [vmem:[#allocation7 + $0xb0] sm:$0xff]   ;;  %v1790_v20 = vld [vmem:[#allocation7 + $0xa8] sm:$0xff]   ;;  %p2037_p5 = por %p2036_p4, %p2035_p3 }
  0x50   :  { %1620 = vmatpush3.bf16.msra.mxu0 %v1772_v2  ;;  %1640 = vmatpush3.bf16.msra.mxu1 %v1781_v6  ;;  %v1791_v21 = vld [vmem:[#allocation7 + $0xa0] sm:$0xff]   ;;  %v1792_v22 = vld [vmem:[#allocation7 + $0x98] sm:$0xff]   ;;  %v1793_v33 = vld [vmem:[#allocation7 + $0x90] sm:$0xff]  }
  0x51   :  { %1621 = vmatprep.subr.bf16.mxu0 %v2070_v0  ;;  %1641 = vmatprep.subr.bf16.mxu1 %v2070_v0  ;;  %v1437_v23 = vld [vmem:[#allocation11] ss:$0 sm:$0xff]  ;;  %v1794_v34 = vld [vmem:[#allocation7 + $0x88] sm:$0xff]   ;;  %v1798_v36 = vld [vmem:[#allocation8 + $0x70] ss:$8 sps:$4 sm:$0xff]   ;;  %p2038_p6 = pnand %p2037_p5, %p2031_p2 }
  0x52   :  { %v1795_v35 = vld [vmem:[#allocation7 + $0x80] sm:$0xff]   ;;  %v1800_v37 = vld [vmem:[#allocation8 + $0x74] ss:$8 sps:$4 sm:$0xff]   ;;  %v1806_v40 = vld [vmem:[#allocation8 + $0x50] ss:$8 sps:$4 sm:$0xff]  }
  0x53   :  { %v1802_v38 = vld [vmem:[#allocation8 + $0x60] ss:$8 sps:$4 sm:$0xff]   ;;  %v1804_v39 = vld [vmem:[#allocation8 + $0x64] ss:$8 sps:$4 sm:$0xff]   ;;  %v1808_v41 = vld [vmem:[#allocation8 + $0x54] ss:$8 sps:$4 sm:$0xff]  }
  0x54   :  { %1622 = vmatpush3.bf16.msra.mxu0 %v1773_v3  ;;  %1642 = vmatpush3.bf16.msra.mxu1 %v1782_v8  ;;  %v1810_v42 = vld [vmem:[#allocation8 + $0x40] ss:$8 sps:$4 sm:$0xff]   ;;  %v1812_v43 = vld [vmem:[#allocation8 + $0x44] ss:$8 sps:$4 sm:$0xff]   ;;  %v1814_v44 = vld [vmem:[#allocation8 + $0x30] ss:$8 sps:$4 sm:$0xff]  }
  0x55   :  { %1623 = vmatprep.subr.bf16.mxu0 %v2070_v0  ;;  %1643 = vmatprep.subr.bf16.mxu1 %v2070_v0  ;;  %v1816_v45 = vld [vmem:[#allocation8 + $0x34] ss:$8 sps:$4 sm:$0xff]   ;;  %v1818_v46 = vld [vmem:[#allocation8 + $0x20] ss:$8 sps:$4 sm:$0xff]   ;;  %v1820_v47 = vld [vmem:[#allocation8 + $0x24] ss:$8 sps:$4 sm:$0xff]  }
  0x56   :  { %v1447_v48 = vld [vmem:[#allocation11 + $0x1] ss:$0 sm:$0xff]  ;;  %v1796_v57 = vld [vmem:[#allocation7 + $0xf8] sm:$0xff]   ;;  %v1797_v59 = vld [vmem:[#allocation7 + $0xf0] sm:$0xff]   ;;  %v2072_v8 = vmov 0  }
  0x57   :  { %v1801_v60 = vld [vmem:[#allocation7 + $0xe8] sm:$0xff]   ;;  %v1805_v61 = vld [vmem:[#allocation7 + $0xe0] sm:$0xff]   ;;  %v1809_v62 = vld [vmem:[#allocation7 + $0xd8] sm:$0xff]  }
  0x58   :  { %1624 = vmatpush3.bf16.msra.mxu0 %v1774_v5  ;;  %1644 = vmatpush3.bf16.msra.mxu1 %v1783_v10  ;;  %v1813_v63 = vld [vmem:[#allocation7 + $0xd0] sm:$0xff]   ;;  %v1817_v1 = vld [vmem:[#allocation7 + $0xc8] sm:$0xff]   ;;  %v1821_v2 = vld [vmem:[#allocation7 + $0xc0] sm:$0xff]  }
  0x59   :  { %1625 = vmatprep.subr.bf16.mxu0 %v2070_v0  ;;  %1645 = vmatprep.subr.bf16.mxu1 %v2070_v0  ;;  %v1824_v3 = vld [vmem:[#allocation8 + $0x14] ss:$8 sps:$4 sm:$0xff]   ;;  %v1822_v4 = vld [vmem:[#allocation8 + $0x10] ss:$8 sps:$4 sm:$0xff]   ;;  %v1828_v6 = vld [vmem:[#allocation8 + $0x4] ss:$8 sps:$4 sm:$0xff]  }
  0x5a   :  { %v2185_v5 = vld [vmem:[#allocation2] sm:$0xff]   ;;  %v1456_v10 = vld [vmem:[#allocation11 + $0x2] ss:$0 sm:$0xff] }
  0x5c   :  { %1626 = vmatpush3.bf16.msra.mxu0 %v1775_v7  ;;  %1646 = vmatpush3.bf16.msra.mxu1 %v1784_v12  ;;  %v1826_v7 = vld [vmem:[#allocation8] ss:$8 sps:$4 sm:$0xff]  }
  0x5d   :  { %1627 = vmatprep.subr.bf16.mxu0 %v2070_v0  ;;  %1647 = vmatprep.subr.bf16.mxu1 %v2070_v0 }
  0x60   :  { %1628 = vmatpush3.bf16.msra.mxu0 %v1776_v9  ;;  %1648 = vmatpush3.bf16.msra.mxu1 %v1785_v15 }
  0x61   :  { %1629 = vmatprep.subr.bf16.mxu0 %v2070_v0  ;;  %1649 = vmatprep.subr.bf16.mxu1 %v2070_v0 }
  0x64   :  { %1630 = vmatpush3.bf16.msra.mxu0 %v1777_v11  ;;  %1650 = vmatpush3.bf16.msra.mxu1 %v1786_v16  ;;  %v1829_v16 = vld [vmem:[#allocation7 + $0x138] sm:$0xff]  }
  0x65   :  { %1631 = vmatprep.subr.bf16.mxu0 %v2070_v0  ;;  %1651 = vmatprep.subr.bf16.mxu1 %v2070_v0 }
  0x68   :  { %1632 = vmatpush3.bf16.msra.mxu0 %v1778_v13  ;;  %1652 = vmatpush3.bf16.msra.mxu1 %v1787_v17 }
  0x69   :  { %1657 = vmatprep.subr.bf16.mxu0 %v2070_v0  ;;  %550 = vmatprep.subr.bf16.mxu1 %v1800_v37  ;;  %v1851_v37 = vld [vmem:[#allocation10 + $0x34] ss:$8 sps:$4 sm:$0xff]  }
  0x6b   :  { %1634 = vmatmul.mubr.bf16.vlgmr.msra.gmra.mxu0 %v1779_v14 }
  0x6c   :  { %1673 = vmatprep.mubr.msk.bf16.mxu0 %vm2071_vm0, %v2070_v0  ;;  %1658 = vmatpush3.bf16.msra.mxu0 %v1788_v18  ;;  %v1830_v18 = vld [vmem:[#allocation7 + $0x130] sm:$0xff]  }
  0x6d   :  { %1659 = vmatprep.subr.bf16.mxu0 %v2070_v0 }
  0x70   :  { %1660 = vmatpush3.bf16.msra.mxu0 %v1789_v19  ;;  %v1831_v19 = vld [vmem:[#allocation7 + $0x128] sm:$0xff]  }
  0x71   :  { %1661 = vmatprep.subr.bf16.mxu0 %v2070_v0 }
  0x74   :  { %1662 = vmatpush3.bf16.msra.mxu0 %v1790_v20  ;;  %v1832_v20 = vld [vmem:[#allocation7 + $0x120] sm:$0xff]  }
  0x75   :  { %1663 = vmatprep.subr.bf16.mxu0 %v2070_v0 }
  0x78   :  { %1664 = vmatpush3.bf16.msra.mxu0 %v1791_v21  ;;  %v1833_v21 = vld [vmem:[#allocation7 + $0x118] sm:$0xff]  }
  0x79   :  { %1665 = vmatprep.subr.bf16.mxu0 %v2070_v0 }
  0x7c   :  { %1666 = vmatpush3.bf16.msra.mxu0 %v1792_v22 }
  0x7d   :  { %1667 = vmatprep.subr.bf16.mxu0 %v2070_v0 }
  0x80   :  { %1668 = vmatpush3.bf16.msra.mxu0 %v1793_v33  ;;  %v1845_v33 = vld [vmem:[#allocation10 + $0x54] ss:$8 sps:$4 sm:$0xff]  }
  0x81   :  { %1669 = vmatprep.subr.bf16.mxu0 %v2070_v0 }
  0x84   :  { %1670 = vmatpush3.bf16.msra.mxu0 %v1794_v34  ;;  %v1843_v34 = vld [vmem:[#allocation10 + $0x50] ss:$8 sps:$4 sm:$0xff]  }
  0x85   :  { %1671 = vmatprep.subr.bf16.mxu0 %v2070_v0 }
  0x88   :  { %1672 = vmatpush3.bf16.msra.mxu0 %v1795_v35  ;;  %v1848_v35 = vld [vmem:[#allocation10 + $0x44] ss:$8 sps:$4 sm:$0xff]  }
  0x89   :  { %1677 = vmatprep.subr.bf16.mxu0 %v2070_v0 }
 0x12b   :  { %v218_v24 = vpop.f32.mrf.mxu0 }
 0x12c   :  { %v219_v26 = vadd.f32 %v1437_v23, %v218_v24 }
 0x12d   :  { %v1635_v25 = vpop.f32.mrf.mxu0 }
 0x12e   :  { %v225_v30 = vmax.f32 %v219_v26, 0.0  ;;  %v1834_v26 = vld [vmem:[#allocation7 + $0x110] sm:$0xff]  }
 0x12f   :  { %v221_v27 = vpop.f32.mrf.mxu0 }
 0x130   :  { %v222_v28 = vadd.f32 %v1437_v23, %v221_v27  ;;  %v1835_v27 = vld [vmem:[#allocation7 + $0x108] sm:$0xff]  }
 0x131   :  { %v1636_v29 = vpop.f32.mrf.mxu0 }
 0x132   :  { %v226_v31 = vmax.f32 %v222_v28, 0.0  ;;  %v1836_v28 = vld [vmem:[#allocation7 + $0x100] sm:$0xff]   ;;  %v1837_v29 = vld [vmem:[#allocation10 + $0x70] ss:$8 sps:$4 sm:$0xff]  }
 0x134   :  { %v227_v32 = vpack.c.bf16 %v226_v31, %v225_v30  ;;  %v1839_v30 = vld [vmem:[#allocation10 + $0x74] ss:$8 sps:$4 sm:$0xff]   ;;  %v1842_v31 = vld [vmem:[#allocation10 + $0x64] ss:$8 sps:$4 sm:$0xff]  }
 0x136   :  { %1654 = vmatmul.mubr.bf16.vlgmr.msra.gmra.mxu1 %v227_v32  ;;  %v1840_v32 = vld [vmem:[#allocation10 + $0x60] ss:$8 sps:$4 sm:$0xff]  }
 0x137   :  { %551 = vmatpush1.bf16.msra.mxu1 %v1798_v36  ;;  %582 = vmatprep.mubr.bf16.mxu1 %v2072_v8  ;;  %v1846_v36 = vld [vmem:[#allocation10 + $0x40] ss:$8 sps:$4 sm:$0xff]  }
 0x138   :  { %552 = vmatprep.subr.bf16.mxu1 %v1804_v39  ;;  %v1854_v39 = vld [vmem:[#allocation10 + $0x24] ss:$8 sps:$4 sm:$0xff]  }
 0x13b   :  { %553 = vmatpush1.bf16.msra.mxu1 %v1802_v38  ;;  %v1849_v38 = vld [vmem:[#allocation10 + $0x30] ss:$8 sps:$4 sm:$0xff]  }
 0x13c   :  { %554 = vmatprep.subr.bf16.mxu1 %v1808_v41 }
 0x13f   :  { %555 = vmatpush1.bf16.msra.mxu1 %v1806_v40  ;;  %v1852_v40 = vld [vmem:[#allocation10 + $0x20] ss:$8 sps:$4 sm:$0xff]  }
 0x140   :  { %556 = vmatprep.subr.bf16.mxu1 %v1812_v43  ;;  %v1490_v43 = vld [vmem:[#allocation11 + $0x3] ss:$0 sm:$0xff] }
 0x143   :  { %557 = vmatpush1.bf16.msra.mxu1 %v1810_v42 }
 0x144   :  { %558 = vmatprep.subr.bf16.mxu1 %v1816_v45 }
 0x147   :  { %559 = vmatpush1.bf16.msra.mxu1 %v1814_v44 }
 0x148   :  { %560 = vmatprep.subr.bf16.mxu1 %v1820_v47 }
 0x14b   :  { %561 = vmatpush1.bf16.msra.mxu1 %v1818_v46 }
 0x14c   :  { %562 = vmatprep.subr.bf16.mxu1 %v1824_v3 }
 0x14f   :  { %563 = vmatpush1.bf16.msra.mxu1 %v1822_v4  ;;  %v1861_v4 = vld [vmem:[#allocation7 + $0x178] sm:$0xff]  }
 0x150   :  { %564 = vmatprep.subr.bf16.mxu1 %v1828_v6  ;;  %v1862_v6 = vld [vmem:[#allocation7 + $0x170] sm:$0xff]  }
 0x153   :  { %565 = vmatpush1.bf16.msra.mxu1 %v1826_v7  ;;  %v1863_v7 = vld [vmem:[#allocation7 + $0x168] sm:$0xff]  }
 0x154   :  { %1697 = vmatprep.subr.bf16.mxu1 %v2070_v0 }
 0x1f6   :  { %v332_v49 = vpop.f32.mrf.mxu1 }
 0x1f7   :  { %v333_v51 = vadd.f32 %v1447_v48, %v332_v49 }
 0x1f8   :  { %v1655_v50 = vpop.f32.mrf.mxu1 }
 0x1f9   :  { %v339_v55 = vmax.f32 %v333_v51, 0.0 }
 0x1fa   :  { %v335_v52 = vpop.f32.mrf.mxu1 }
 0x1fb   :  { %v336_v53 = vadd.f32 %v1447_v48, %v335_v52  ;;  %v1857_v52 = vld [vmem:[#allocation10 + $0x14] ss:$8 sps:$4 sm:$0xff]  }
 0x1fc   :  { %v1656_v54 = vpop.f32.mrf.mxu1 }
 0x1fd   :  { %v340_v56 = vmax.f32 %v336_v53, 0.0  ;;  %v1855_v53 = vld [vmem:[#allocation10 + $0x10] ss:$8 sps:$4 sm:$0xff]   ;;  %v1860_v54 = vld [vmem:[#allocation10 + $0x4] ss:$8 sps:$4 sm:$0xff]  }
 0x1ff   :  { %v341_v58 = vpack.c.bf16 %v340_v56, %v339_v55  ;;  %v1858_v55 = vld [vmem:[#allocation10] ss:$8 sps:$4 sm:$0xff]  }
 0x201   :  { %1674 = vmatmul.mubr.bf16.vlgmr.msra.gmra.mxu0 %v341_v58 }
 0x202   :  { %1678 = vmatpush3.bf16.msra.mxu0 %v1796_v57  ;;  %1693 = vmatprep.mubr.msk.bf16.mxu0 %vm2071_vm0, %v2070_v0  ;;  %v1491_v57 = vld [vmem:[#allocation11 + $0x4] ss:$0 sm:$0xff] }
 0x203   :  { %1679 = vmatprep.subr.bf16.mxu0 %v2070_v0 }
 0x206   :  { %1680 = vmatpush3.bf16.msra.mxu0 %v1797_v59 }
 0x207   :  { %1681 = vmatprep.subr.bf16.mxu0 %v2070_v0 }
 0x20a   :  { %1682 = vmatpush3.bf16.msra.mxu0 %v1801_v60 }
 0x20b   :  { %1683 = vmatprep.subr.bf16.mxu0 %v2070_v0 }
 0x20e   :  { %1684 = vmatpush3.bf16.msra.mxu0 %v1805_v61 }
 0x20f   :  { %1685 = vmatprep.subr.bf16.mxu0 %v2070_v0 }
 0x212   :  { %1686 = vmatpush3.bf16.msra.mxu0 %v1809_v62 }
 0x213   :  { %1687 = vmatprep.subr.bf16.mxu0 %v2070_v0 }
 0x216   :  { %1688 = vmatpush3.bf16.msra.mxu0 %v1813_v63 }
 0x217   :  { %1689 = vmatprep.subr.bf16.mxu0 %v2070_v0 }
 0x21a   :  { %1690 = vmatpush3.bf16.msra.mxu0 %v1817_v1 }
 0x21b   :  { %1691 = vmatprep.subr.bf16.mxu0 %v2070_v0 }
 0x21e   :  { %1692 = vmatpush3.bf16.msra.mxu0 %v1821_v2 }
 0x21f   :  { %929 = vmatprep.subr.bf16.mxu0 %v1839_v30 }
 0x221   :  { %1694 = vmatmul.mubr.bf16.vlgmr.msra.gmra.mxu0 %v2185_v5 }
 0x222   :  { %961 = vmatprep.mubr.bf16.mxu0 %v2072_v8  ;;  %930 = vmatpush1.bf16.msra.mxu0 %v1837_v29  ;;  %v596_v29 = vunpack.c.h.bf16 %v2185_v5 }
 0x223   :  { %931 = vmatprep.subr.bf16.mxu0 %v1842_v31  ;;  %v1870_v31 = vld [vmem:[#allocation7 + $0x1b0] sm:$0xff]  }
 0x226   :  { %932 = vmatpush1.bf16.msra.mxu0 %v1840_v32 }
 0x227   :  { %933 = vmatprep.subr.bf16.mxu0 %v1845_v33 }
 0x22a   :  { %934 = vmatpush1.bf16.msra.mxu0 %v1843_v34 }
 0x22b   :  { %935 = vmatprep.subr.bf16.mxu0 %v1848_v35  ;;  %v1871_v35 = vld [vmem:[#allocation7 + $0x1a8] sm:$0xff]  }
 0x22e   :  { %936 = vmatpush1.bf16.msra.mxu0 %v1846_v36 }
 0x22f   :  { %937 = vmatprep.subr.bf16.mxu0 %v1851_v37 }
 0x232   :  { %938 = vmatpush1.bf16.msra.mxu0 %v1849_v38 }
 0x233   :  { %939 = vmatprep.subr.bf16.mxu0 %v1854_v39  ;;  %v1872_v39 = vld [vmem:[#allocation7 + $0x1a0] sm:$0xff]  }
 0x236   :  { %940 = vmatpush1.bf16.msra.mxu0 %v1852_v40  ;;  %v1873_v40 = vld [vmem:[#allocation7 + $0x198] sm:$0xff]  }
 0x237   :  { %941 = vmatprep.subr.bf16.mxu0 %v1857_v52  ;;  %v1891_v52 = vld [vmem:[#allocation10 + $0xb4] ss:$8 sps:$4 sm:$0xff]  }
 0x23a   :  { %942 = vmatpush1.bf16.msra.mxu0 %v1855_v53  ;;  %v1894_v53 = vld [vmem:[#allocation10 + $0xa4] ss:$8 sps:$4 sm:$0xff]  }
 0x23b   :  { %943 = vmatprep.subr.bf16.mxu0 %v1860_v54  ;;  %v1892_v54 = vld [vmem:[#allocation10 + $0xa0] ss:$8 sps:$4 sm:$0xff]  }
 0x23e   :  { %944 = vmatpush1.bf16.msra.mxu0 %v1858_v55 }
 0x23f   :  { %1737 = vmatprep.subr.bf16.mxu0 %v2070_v0 }
 0x2c1   :  { %v446_v9 = vpop.f32.mrf.mxu0 }
 0x2c2   :  { %v447_v13 = vadd.f32 %v1456_v10, %v446_v9  ;;  %v1864_v9 = vld [vmem:[#allocation7 + $0x160] sm:$0xff]  }
 0x2c3   :  { %v1675_v11 = vpop.f32.mrf.mxu0 }
 0x2c4   :  { %v1866_v11 = vld [vmem:[#allocation7 + $0x150] sm:$0xff]  }
 0x2c5   :  { %v449_v12 = vpop.f32.mrf.mxu0 }
 0x2c6   :  { %v450_v14 = vadd.f32 %v1456_v10, %v449_v12  ;;  %v1865_v10 = vld [vmem:[#allocation7 + $0x158] sm:$0xff]   ;;  %v1867_v12 = vld [vmem:[#allocation7 + $0x148] sm:$0xff]  }
 0x2c7   :  { %v1676_v15 = vpop.f32.mrf.mxu0 }
 0x2c8   :  { %v453_v17 = vpack.c.bf16 %v450_v14, %v447_v13  ;;  %v1868_v13 = vld [vmem:[#allocation7 + $0x140] sm:$0xff]  }
 0x2c9   :  { %v1517_v15 = vld [vmem:[#allocation11 + $0x6] ss:$0 sm:$0xff] }
 0x2ca   :  { %583 = vmatmul.mubr.bf16.vlgmr.msra.gmra.mxu1 %v453_v17 }
 0x2cb   :  { %1698 = vmatpush3.bf16.msra.mxu1 %v1829_v16  ;;  %1713 = vmatprep.mubr.msk.bf16.mxu1 %vm2071_vm0, %v2070_v0 }
 0x2cc   :  { %1699 = vmatprep.subr.bf16.mxu1 %v2070_v0 }
 0x2cf   :  { %1700 = vmatpush3.bf16.msra.mxu1 %v1830_v18 }
 0x2d0   :  { %1701 = vmatprep.subr.bf16.mxu1 %v2070_v0 }
 0x2d3   :  { %1702 = vmatpush3.bf16.msra.mxu1 %v1831_v19 }
 0x2d4   :  { %1703 = vmatprep.subr.bf16.mxu1 %v2070_v0 }
 0x2d7   :  { %1704 = vmatpush3.bf16.msra.mxu1 %v1832_v20 }
 0x2d8   :  { %1705 = vmatprep.subr.bf16.mxu1 %v2070_v0 }
 0x2db   :  { %1706 = vmatpush3.bf16.msra.mxu1 %v1833_v21 }
 0x2dc   :  { %1707 = vmatprep.subr.bf16.mxu1 %v2070_v0 }
 0x2df   :  { %1708 = vmatpush3.bf16.msra.mxu1 %v1834_v26  ;;  %v1869_v26 = vld [vmem:[#allocation7 + $0x1b8] sm:$0xff]  }
 0x2e0   :  { %1709 = vmatprep.subr.bf16.mxu1 %v2070_v0 }
 0x2e1   :  { %v702_v22 = vpop.f32.mrf.mxu0 }
 0x2e3   :  { %v1695_v23 = vpop.f32.mrf.mxu0  ;;  %1710 = vmatpush3.bf16.msra.mxu1 %v1835_v27  ;;  %v595_v27 = vunpack.c.l.bf16 %v2185_v5 }
 0x2e4   :  { %1711 = vmatprep.subr.bf16.mxu1 %v2070_v0 }
 0x2e5   :  { %v705_v24 = vpop.f32.mrf.mxu0 }
 0x2e7   :  { %v1696_v25 = vpop.f32.mrf.mxu0  ;;  %1712 = vmatpush3.bf16.msra.mxu1 %v1836_v28 }
 0x2e8   :  { %1717 = vmatprep.subr.bf16.mxu1 %v2070_v0  ;;  %v1516_v25 = vld [vmem:[#allocation11 + $0x5] ss:$0 sm:$0xff] }
 0x38a   :  { %v584_v41 = vpop.f32.mrf.mxu1 }
 0x38b   :  { %v703_v42 = vadd.f32 %v702_v22, %v584_v41  ;;  %v1874_v41 = vld [vmem:[#allocation7 + $0x190] sm:$0xff]  }
 0x38c   :  { %v2201_v44 = vpop.f32.mrf.mxu1 }
 0x38d   :  { %v714_v46 = vadd.f32 %v1490_v43, %v703_v42  ;;  %v1875_v42 = vld [vmem:[#allocation7 + $0x188] sm:$0xff]  }
 0x38e   :  { %v588_v45 = vpop.f32.mrf.mxu1 }
 0x38f   :  { %v706_v47 = vadd.f32 %v705_v24, %v588_v45  ;;  %v716_v49 = vmax.f32 %v714_v46, 0.0  ;;  %v1877_v45 = vld [vmem:[#allocation10 + $0xf0] ss:$8 sps:$4 sm:$0xff]   ;;  %v1879_v46 = vld [vmem:[#allocation10 + $0xf4] ss:$8 sps:$4 sm:$0xff]  }
 0x390   :  { %v2206_v56 = vpop.f32.mrf.mxu1 }
 0x391   :  { %v715_v48 = vadd.f32 %v1490_v43, %v706_v47  ;;  %v1876_v43 = vld [vmem:[#allocation7 + $0x180] sm:$0xff]  }
 0x392   :  { %v1880_v47 = vld [vmem:[#allocation10 + $0xe0] ss:$8 sps:$4 sm:$0xff]  }
 0x393   :  { %v717_v50 = vmax.f32 %v715_v48, 0.0  ;;  %v1885_v48 = vld [vmem:[#allocation10 + $0xd4] ss:$8 sps:$4 sm:$0xff]  }
 0x395   :  { %v718_v51 = vpack.c.bf16 %v717_v50, %v716_v49  ;;  %v1883_v49 = vld [vmem:[#allocation10 + $0xd0] ss:$8 sps:$4 sm:$0xff]   ;;  %v1888_v50 = vld [vmem:[#allocation10 + $0xc4] ss:$8 sps:$4 sm:$0xff]  }
 0x397   :  { %1714 = vmatmul.mubr.bf16.vlgmr.msra.gmra.mxu1 %v718_v51  ;;  %v1886_v51 = vld [vmem:[#allocation10 + $0xc0] ss:$8 sps:$4 sm:$0xff]  }
 0x398   :  { %1733 = vmatprep.mubr.msk.bf16.mxu1 %vm2071_vm0, %v2070_v0  ;;  %1718 = vmatpush3.bf16.msra.mxu1 %v1861_v4 }
 0x399   :  { %1719 = vmatprep.subr.bf16.mxu1 %v2070_v0 }
 0x39c   :  { %1720 = vmatpush3.bf16.msra.mxu1 %v1862_v6  ;;  %v1897_v6 = vld [vmem:[#allocation10 + $0x94] ss:$8 sps:$4 sm:$0xff]  }
 0x39d   :  { %1721 = vmatprep.subr.bf16.mxu1 %v2070_v0 }
 0x3a0   :  { %1722 = vmatpush3.bf16.msra.mxu1 %v1863_v7  ;;  %v1895_v7 = vld [vmem:[#allocation10 + $0x90] ss:$8 sps:$4 sm:$0xff]  }
 0x3a1   :  { %1723 = vmatprep.subr.bf16.mxu1 %v2070_v0 }
 0x3a4   :  { %1724 = vmatpush3.bf16.msra.mxu1 %v1864_v9  ;;  %v1900_v9 = vld [vmem:[#allocation10 + $0x84] ss:$8 sps:$4 sm:$0xff]  }
 0x3a5   :  { %1725 = vmatprep.subr.bf16.mxu1 %v2070_v0 }
 0x3a8   :  { %1726 = vmatpush3.bf16.msra.mxu1 %v1865_v10  ;;  %v1898_v10 = vld [vmem:[#allocation10 + $0x80] ss:$8 sps:$4 sm:$0xff]  }
 0x3a9   :  { %1727 = vmatprep.subr.bf16.mxu1 %v2070_v0 }
 0x3ac   :  { %1728 = vmatpush3.bf16.msra.mxu1 %v1866_v11 }
 0x3ad   :  { %1729 = vmatprep.subr.bf16.mxu1 %v2070_v0 }
 0x3b0   :  { %1730 = vmatpush3.bf16.msra.mxu1 %v1867_v12 }
 0x3b1   :  { %1731 = vmatprep.subr.bf16.mxu1 %v2070_v0 }
 0x3b4   :  { %1732 = vmatpush3.bf16.msra.mxu1 %v1868_v13 }
 0x3b5   :  { %1330 = vmatprep.subr.bf16.mxu1 %v1879_v46 }
 0x457   :  { %v823_v58 = vpop.f32.mrf.mxu1 }
 0x458   :  { %v824_v60 = vadd.f32 %v1491_v57, %v823_v58  ;;  %v1526_v58 = vld [vmem:[#allocation11 + $0x7] ss:$0 sm:$0xff] }
 0x459   :  { %v1715_v59 = vpop.f32.mrf.mxu1 }
 0x45a   :  { %v830_v1 = vmax.f32 %v824_v60, 0.0 }
 0x45b   :  { %v826_v61 = vpop.f32.mrf.mxu1 }
 0x45c   :  { %v827_v62 = vadd.f32 %v1491_v57, %v826_v61 }
 0x45d   :  { %v1716_v63 = vpop.f32.mrf.mxu1 }
 0x45e   :  { %v831_v2 = vmax.f32 %v827_v62, 0.0 }
 0x460   :  { %v832_v3 = vpack.c.bf16 %v831_v2, %v830_v1 }
 0x462   :  { %962 = vmatmul.mubr.bf16.vlgmr.msra.gmra.mxu0 %v832_v3 }
 0x463   :  { %1753 = vmatprep.mubr.msk.bf16.mxu0 %vm2071_vm0, %v2070_v0  ;;  %1738 = vmatpush3.bf16.msra.mxu0 %v1869_v26 }
 0x464   :  { %1739 = vmatprep.subr.bf16.mxu0 %v2070_v0 }
 0x467   :  { %1740 = vmatpush3.bf16.msra.mxu0 %v1870_v31 }
 0x468   :  { %1741 = vmatprep.subr.bf16.mxu0 %v2070_v0 }
 0x46b   :  { %1742 = vmatpush3.bf16.msra.mxu0 %v1871_v35 }
 0x46c   :  { %1743 = vmatprep.subr.bf16.mxu0 %v2070_v0 }
 0x46f   :  { %1744 = vmatpush3.bf16.msra.mxu0 %v1872_v39 }
 0x470   :  { %1745 = vmatprep.subr.bf16.mxu0 %v2070_v0 }
 0x473   :  { %1746 = vmatpush3.bf16.msra.mxu0 %v1873_v40 }
 0x474   :  { %1747 = vmatprep.subr.bf16.mxu0 %v2070_v0 }
 0x477   :  { %1748 = vmatpush3.bf16.msra.mxu0 %v1874_v41 }
 0x478   :  { %1749 = vmatprep.subr.bf16.mxu0 %v2070_v0 }
 0x47b   :  { %1750 = vmatpush3.bf16.msra.mxu0 %v1875_v42 }
 0x47c   :  { %1751 = vmatprep.subr.bf16.mxu0 %v2070_v0  ;;  %v1889_v0 = vld [vmem:[#allocation10 + $0xb0] ss:$8 sps:$4 sm:$0xff]  }
 0x47f   :  { %1752 = vmatpush3.bf16.msra.mxu0 %v1876_v43 }
 0x522   :  { %v963_v14 = vpop.f32.mrf.mxu0 }
 0x523   :  { %v977_v28 = vadd.f32 %v1516_v25, %v963_v14 }
 0x524   :  { %v965_v16 = vpop.f32.mrf.mxu0 }
 0x525   :  { %v984_v17 = vadd.f32 %v1517_v15, %v965_v16  ;;  %v986_v33 = vsub.f32 %v595_v27, %v977_v28 }
 0x526   :  { %v967_v18 = vpop.f32.mrf.mxu0 }
 0x527   :  { %v988_v19 = vsub.f32 0.0, %v984_v17  ;;  %996 = vadd.xlane.f32.xlu0 %v984_v17  ;;  %v978_v30 = vadd.f32 %v1516_v25, %v967_v18 }
 0x528   :  { %v969_v20 = vpop.f32.mrf.mxu0 }
 0x529   :  { %v990_v21 = vmul.f32 1.442695, %v988_v19  ;;  %v985_v22 = vadd.f32 %v1517_v15, %v969_v20  ;;  %v987_v34 = vsub.f32 %v596_v29, %v978_v30  ;;  %v1553_v20 = vld [vmem:[#allocation11 + $0xa] ss:$0 sm:$0xff]  ;;  %v1552_v30 = vld [vmem:[#allocation11 + $0x9] ss:$0 sm:$0xff] }
 0x52b   :  { %v989_v23 = vsub.f32 0.0, %v985_v22  ;;  %998 = vadd.xlane.f32.xlu0 %v985_v22  ;;  %1902 = vpow2.f32 %v990_v21 }
 0x52d   :  { %v992_v24 = vmul.f32 1.442695, %v989_v23 }
 0x52f   :  { %1904 = vpow2.f32 %v992_v24 }
 0x538   :  { %v1903_v32 = vpop.eup %1902 }
 0x539   :  { %v2221_v37 = vmul.f32 %v1903_v32, %v986_v33 }
 0x53c   :  { %v1905_v36 = vpop.eup %1904 }
 0x53d   :  { %v2223_v38 = vmul.f32 %v1905_v36, %v987_v34 }
 0x53f   :  { %v1002_v5 = vpack.c.bf16 %v2223_v38, %v2221_v37 }
 0x541   :  { %1734 = vmatmul.mubr.bf16.vlgmr.msra.gmra.mxu1 %v1002_v5 }
 0x542   :  { %1362 = vmatprep.mubr.bf16.mxu1 %v2072_v8  ;;  %v1882_v8 = vld [vmem:[#allocation10 + $0xe4] ss:$8 sps:$4 sm:$0xff]   ;;  %1331 = vmatpush1.bf16.msra.mxu1 %v1877_v45 }
 0x543   :  { %1332 = vmatprep.subr.bf16.mxu1 %v1882_v8 }
 0x546   :  { %1333 = vmatpush1.bf16.msra.mxu1 %v1880_v47 }
 0x547   :  { %1334 = vmatprep.subr.bf16.mxu1 %v1885_v48 }
 0x54a   :  { %1335 = vmatpush1.bf16.msra.mxu1 %v1883_v49 }
 0x54b   :  { %1336 = vmatprep.subr.bf16.mxu1 %v1888_v50 }
 0x54e   :  { %1337 = vmatpush1.bf16.msra.mxu1 %v1886_v51 }
 0x54f   :  { %1338 = vmatprep.subr.bf16.mxu1 %v1891_v52 }
 0x552   :  { %1339 = vmatpush1.bf16.msra.mxu1 %v1889_v0 }
 0x553   :  { %1340 = vmatprep.subr.bf16.mxu1 %v1894_v53 }
 0x556   :  { %1341 = vmatpush1.bf16.msra.mxu1 %v1892_v54 }
 0x557   :  { %1342 = vmatprep.subr.bf16.mxu1 %v1897_v6 }
 0x55a   :  { %1343 = vmatpush1.bf16.msra.mxu1 %v1895_v7 }
 0x55b   :  { %1344 = vmatprep.subr.bf16.mxu1 %v1900_v9 }
 0x55e   :  { %1345 = vmatpush1.bf16.msra.mxu1 %v1898_v10 }
 0x5b0   :  { %v997_v42 = vpop.xlane.xlu0 %996 }
 0x5b1   :  { %v1000_v8 = vsub.f32 0.0, %v997_v42 }
 0x5b4   :  { %v999_v43 = vpop.xlane.xlu0 %998 }
 0x5b5   :  { %v1001_v52 = vsub.f32 0.0, %v999_v43 }
 0x601   :  { %v1102_v55 = vpop.f32.mrf.mxu1 }
 0x602   :  { %v1103_v57 = vadd.f32 %v1102_v55, %v2201_v44  ;;  %v1527_v44 = vld [vmem:[#allocation11 + $0x8] ss:$0 sm:$0xff] }
 0x603   :  { %v1735_v59 = vpop.f32.mrf.mxu1 }
 0x604   :  { %v1114_v61 = vadd.f32 %v1526_v58, %v1103_v57 }
 0x605   :  { %v1105_v60 = vpop.f32.mrf.mxu1 }
 0x606   :  { %v1106_v62 = vadd.f32 %v1105_v60, %v2206_v56  ;;  %v1116_v2 = vmax.f32 %v1114_v61, 0.0 }
 0x607   :  { %v1736_v63 = vpop.f32.mrf.mxu1 }
 0x608   :  { %v1115_v1 = vadd.f32 %v1526_v58, %v1106_v62 }
 0x60a   :  { %v1117_v3 = vmax.f32 %v1115_v1, 0.0 }
 0x60c   :  { %v1118_v4 = vpack.c.bf16 %v1117_v3, %v1116_v2 }
 0x60e   :  { %1754 = vmatmul.mubr.bf16.vlgmr.msra.gmra.mxu0 %v1118_v4 }
 0x6ce   :  { %v1223_v11 = vpop.f32.mrf.mxu0 }
 0x6cf   :  { %v1224_v13 = vadd.f32 %v1527_v44, %v1223_v11 }
 0x6d0   :  { %v1755_v12 = vpop.f32.mrf.mxu0 }
 0x6d1   :  { %v1230_v16 = vmax.f32 %v1224_v13, 0.0 }
 0x6d2   :  { %v1226_v14 = vpop.f32.mrf.mxu0 }
 0x6d3   :  { %v1227_v56 = vadd.f32 %v1527_v44, %v1226_v14 }
 0x6d4   :  { %v1756_v15 = vpop.f32.mrf.mxu0 }
 0x6d5   :  { %v1231_v17 = vmax.f32 %v1227_v56, 0.0 }
 0x6d7   :  { %v1232_v18 = vpack.c.bf16 %v1231_v17, %v1230_v16 }
 0x6d9   :  { %1363 = vmatmul.mubr.bf16.vlgmr.msra.gmra.mxu1 %v1232_v18 }
 0x799   :  { %v1364_v19 = vpop.f32.mrf.mxu1 }
 0x79a   :  { %v1378_v31 = vadd.f32 %v1552_v30, %v1364_v19 }
 0x79b   :  { %v1366_v21 = vpop.f32.mrf.mxu1 }
 0x79c   :  { %v1385_v22 = vadd.f32 %v1553_v20, %v1366_v21  ;;  %v1387_v33 = vsub.f32 %v2221_v37, %v1378_v31 }
 0x79d   :  { %v1368_v23 = vpop.f32.mrf.mxu1 }
 0x79e   :  { %v1389_v24 = vsub.f32 0.0, %v1385_v22  ;;  %1397 = vadd.xlane.f32.xlu0 %v1385_v22  ;;  %v1379_v32 = vadd.f32 %v1552_v30, %v1368_v23 }
 0x79f   :  { %v1370_v25 = vpop.f32.mrf.mxu1 }
 0x7a0   :  { %v1391_v26 = vmul.f32 1.442695, %v1389_v24  ;;  %v1386_v27 = vadd.f32 %v1553_v20, %v1370_v25  ;;  %v1388_v36 = vsub.f32 %v2223_v38, %v1379_v32 }
 0x7a2   :  { %1906 = vpow2.f32 %v1391_v26  ;;  %v1390_v28 = vsub.f32 0.0, %v1386_v27 }
 0x7a4   :  { %v1393_v29 = vmul.f32 1.442695, %v1390_v28 }
 0x7a6   :  { %1908 = vpow2.f32 %v1393_v29 }
 0x7af   :  { %v1907_v34 = vpop.eup %1906 }
 0x7b0   :  { %v1395_v35 = vmul.f32 %v1907_v34, %v1387_v33 }
 0x7b2   :  { %v1403_v5 = vmul.f32 %v1395_v35, %v1395_v35 }
 0x7b3   :  { %v1909_v39 = vpop.eup %1908 }
 0x7b4   :  { %1405 = vadd.xlane.f32.xlu1 %v1403_v5  ;;  %v1396_v40 = vmul.f32 %v1909_v39, %v1388_v36 }
 0x7b6   :  { %v1404_v41 = vmul.f32 %v1396_v40, %v1396_v40 }
 0x7b8   :  { %1407 = vadd.xlane.f32.xlu1 %v1404_v41 }
 0x7bc   :  { %1399 = vadd.xlane.f32.xlu1 %v1386_v27 }
 0x827   :  { %v1398_v45 = vpop.xlane.xlu0 %1397 }
 0x828   :  { %v1401_v48 = vsub.f32 %v1000_v8, %v1398_v45 }
 0x83d   :  { %v1406_v46 = vpop.xlane.xlu1 %1405 }
 0x83e   :  { %v1409_v47 = vmul.f32 -0.5, %v1406_v46 }
 0x840   :  { %v1411_v49 = vadd.f32 -7.351508, %v1409_v47 }
 0x841   :  { %v1408_v37 = vpop.xlane.xlu1 %1407 }
 0x842   :  { %v1413_v50 = vadd.f32 %v1411_v49, %v1401_v48  ;;  %v1410_v51 = vmul.f32 -0.5, %v1408_v37 }
 0x844   :  { %1415 = vst [vmem:[#allocation13] sm:$0xff] %v1413_v50  ;;  %v1412_v0 = vadd.f32 -7.351508, %v1410_v51 }
 0x845   :  { %v1400_v38 = vpop.xlane.xlu1 %1399 }
 0x846   :  { %v1402_v53 = vsub.f32 %v1001_v52, %v1400_v38 }
 0x848   :  { %v1414_v54 = vadd.f32 %v1412_v0, %v1402_v53 }
 0x84a   :  { %1416 = vst [vmem:[#allocation13 + $0x8] sm:$0xff] %v1414_v54 }
 0x84b   :  { %2041 = shalt.err (!%p2038_p6)
}
 0x84c   :  { %1428 = dma.vmem_to_hbm [thread:$0]  %s1423_s5, 256, %s2249_s6, [#allocation4], %s2064_s7, %s2064_s7, %s2065_s8  }
 0x84d   :  { %2058 = dma.done.wait [#allocation4], 256  }
 0x84e   :  { %2059 = vsyncadd [#allocation4], 4294967040 }
 0x84f   :  { %1432 = vsyncpa [#allocation3], 1 }
 0x850   :  { %1433 = vsyncpa [#allocation6], 1 }
 0x851   :  { %1434 = vsyncpa [#allocation9], 1 }
 0x852   :  { %1435 = vsyncpa [#allocation12], 1 }
 0x853   :  { %1436 = vsyncpa [#allocation4], 1 }

</bundles_post_ra>
